<compile_context>
chip_gen: v7x
topology: tpu7x:2x2x1
jax: 0.10.0
libtpu: 0.0.40
codegen_flags: <defaults>
</compile_context>

<pallas_src>
import jax
import jax.numpy as jnp
from jax.experimental import pallas as pl
from jax.experimental.pallas import tpu as pltpu

KH = KW = 4
STRIDE = 2
PAD = 1
BN_EPS = 1e-5
LEAKY_SLOPE = 0.2
LANE = 128


def _round_up(x, m):
    return (x + m - 1) // m * m


def _vmem_budget_bytes():
    """~3/4 of per-core VMEM: ~48 MiB on v7x (64 MiB), ~96 MiB on v5e/v6e (128 MiB)."""
    cap = 64 * 1024 * 1024
    try:
        info = pltpu.get_tpu_info()
        cap = int(getattr(info, "vmem_capacity_bytes", cap))
    except Exception:
        pass
    return max(32 * 1024 * 1024, min(cap * 3 // 4, 96 * 1024 * 1024))


# ---------- Phase 1: tiled conv matmul (+K reduction) + per-tile BN partial stats ------
def _conv_stats_kernel(p_ref, w_ref, conv_ref, stats_ref, acc_ref):
    # grid = (num_m, num_k); axis 1 (K) is the reduction axis.
    # p_ref:     [TM, TK]       patch tile (bf16 by default)
    # w_ref:     [TK, C_pad]    weight tile (resident when num_k == 1: index never moves)
    # conv_ref:  [TM, C_pad]    conv output written once at the last K step (bf16)
    # stats_ref: [1, 2, C_pad]  per-M-tile (sum, sum_sq) over rows, from the f32 acc
    # acc_ref:   [TM, C_pad]    f32 accumulator (VMEM scratch)
    k = pl.program_id(1)
    prod = jnp.dot(p_ref[...], w_ref[...], preferred_element_type=jnp.float32)

    @pl.when(k == 0)
    def _init():
        acc_ref[...] = prod

    @pl.when(k > 0)
    def _accum():
        acc_ref[...] += prod

    @pl.when(k == pl.num_programs(1) - 1)
    def _finish():
        acc = acc_ref[...]
        conv_ref[...] = acc.astype(conv_ref.dtype)
        s = jnp.sum(acc, axis=0, keepdims=True)            # [1, C_pad]
        sq = jnp.sum(acc * acc, axis=0, keepdims=True)      # [1, C_pad]
        stats_ref[...] = jnp.concatenate([s, sq], axis=0)[None]


# ---------- Phase 2: fused BN affine (scale*x + shift) + LeakyReLU ---------------------
def _bn_lrelu_kernel(conv_ref, scale_ref, shift_ref, o_ref):
    x = conv_ref[...].astype(jnp.float32)                   # [TM2, C_pad]
    y = x * scale_ref[...] + shift_ref[...]
    o_ref[...] = jnp.where(y >= 0, y, LEAKY_SLOPE * y).astype(o_ref.dtype)


# ---------- Wrapper glue ----------------------------------------------------------------
def _im2col_nhwc(x, dtype):
    """x: [N, Cin, H, W] -> patches [N*OH*OW, KH*KW*Cin] in `dtype`.

    K is ordered (kh, kw, cin) (channels-last taps, no stack+transpose relayout); the
    weight matrix is re-ordered to match in `unet_down`.
    """
    n, cin, h, w = x.shape
    oh = (h + 2 * PAD - KH) // STRIDE + 1
    ow = (w + 2 * PAD - KW) // STRIDE + 1
    xp = jnp.pad(x, ((0, 0), (0, 0), (PAD, PAD), (PAD, PAD)))
    xp = jnp.transpose(xp, (0, 2, 3, 1)).astype(dtype)       # NHWC, matmul dtype
    taps = [
        xp[:, kh:kh + STRIDE * oh:STRIDE, kw:kw + STRIDE * ow:STRIDE, :]
        for kh in range(KH) for kw in range(KW)
    ]                                                        # each [N, OH, OW, Cin]
    patches = jnp.concatenate(taps, axis=-1)                 # [N, OH, OW, KH*KW*Cin]
    return patches.reshape(n * oh * ow, KH * KW * cin), (n, oh, ow)


def _choose_tiles(m_raw, k_raw, c_pad, mm_itemsize, conv_itemsize, budget):
    def est(tm, tk):
        patches = 2 * tm * tk * mm_itemsize        # double-buffered patch tile
        weight = 2 * tk * c_pad * mm_itemsize      # weight block (resident if num_k==1)
        convo = 2 * tm * c_pad * conv_itemsize     # conv output tile
        acc = tm * c_pad * 4                       # f32 accumulator scratch
        slack = 2 * 1024 * 1024
        return patches + weight + convo + acc + slack

    # Prefer the whole (lane-padded) K in one tile so weights stay resident.
    tk = _round_up(k_raw, LANE)
    while est(16, tk) > budget and tk > LANE:
        tk = max(LANE, _round_up(tk // 2, LANE))
    k_pad = _round_up(k_raw, tk)

    # Largest M tile that fits the budget ...
    tm = 16
    for cand in (2048, 1024, 512, 256, 128, 64, 32, 16):
        if est(cand, tk) <= budget:
            tm = cand
            break
    # ... but keep >=2 M tiles when possible (v7x megacore sharding of the "parallel"
    # axis) and round rows to 16 for native bf16 (16,128) packing.
    tm = max(16, min(tm, _round_up(-(-m_raw // 2), 16)))
    m_pad = _round_up(m_raw, tm)
    return tm, tk, m_pad, k_pad


def unet_down(x, conv_weight, bn_gamma, bn_beta, *, use_bf16_matmul=True,
              channels_last=False):
    """x: [N, Cin, H, W] (NCHW).  conv_weight: [Cout, Cin, KH, KW] (PyTorch layout).
    Returns [N, Cout, H//2, W//2] (NCHW), or NHWC if channels_last=True."""
    cout, cin = conv_weight.shape[0], conv_weight.shape[1]
    mm_dtype = jnp.bfloat16 if use_bf16_matmul else jnp.float32
    conv_dtype = jnp.bfloat16 if use_bf16_matmul else jnp.float32
    mm_isz = 2 if use_bf16_matmul else 4
    conv_isz = 2 if use_bf16_matmul else 4
    out_dtype = x.dtype
    out_isz = x.dtype.itemsize

    patches, (n, oh, ow) = _im2col_nhwc(x, mm_dtype)          # [M, K]
    m_raw, k_raw = patches.shape
    c_pad = _round_up(cout, LANE)
    budget = _vmem_budget_bytes()
    tm, tk, m_pad, k_pad = _choose_tiles(m_raw, k_raw, c_pad, mm_isz, conv_isz, budget)
    num_m, num_k = m_pad // tm, k_pad // tk

    # Zero-pad to tile boundaries (zeros are inert for both the matmul and the BN stats:
    # they contribute 0 to sum and sum_sq and we divide by the true M).
    patches_p = jnp.pad(patches, ((0, m_pad - m_raw), (0, k_pad - k_raw)))
    # (KH, KW, Cin, Cout) reshape matches the (kh, kw, cin) patch K ordering.
    w_mat = jnp.transpose(conv_weight, (2, 3, 1, 0)).reshape(KH * KW * cin, cout)
    w_p = jnp.pad(w_mat, ((0, k_pad - k_raw), (0, c_pad - cout))).astype(mm_dtype)

    flops = 2 * m_pad * k_pad * c_pad
    bytes_accessed = (m_pad * k_pad * mm_isz
                      + k_pad * c_pad * mm_isz * (num_m if num_k > 1 else 1)
                      + m_pad * c_pad * conv_isz
                      + num_m * 2 * c_pad * 4)

    # ---------------- Phase 1: conv matmul + partial stats ----------------
    conv, stats = pl.pallas_call(
        _conv_stats_kernel,
        out_shape=(
            jax.ShapeDtypeStruct((m_pad, c_pad), conv_dtype),
            jax.ShapeDtypeStruct((num_m, 2, c_pad), jnp.float32),
        ),
        grid=(num_m, num_k),
        in_specs=[
            pl.BlockSpec((tm, tk), lambda i, k: (i, k)),
            pl.BlockSpec((tk, c_pad), lambda i, k: (k, 0)),
        ],
        out_specs=(
            pl.BlockSpec((tm, c_pad), lambda i, k: (i, 0)),
            pl.BlockSpec((1, 2, c_pad), lambda i, k: (i, 0, 0)),
        ),
        scratch_shapes=[pltpu.VMEM((tm, c_pad), jnp.float32)],
        compiler_params=pltpu.CompilerParams(
            dimension_semantics=("parallel", "arbitrary"),
            vmem_limit_bytes=budget,
        ),
        cost_estimate=pl.CostEstimate(
            flops=flops, transcendentals=0, bytes_accessed=bytes_accessed),
    )(patches_p, w_p)

    # ------------- Tiny global reduction + BN affine precompute (JAX glue) -------------
    sums = jnp.sum(stats[:, 0, :], axis=0)                    # [C_pad]
    sumsq = jnp.sum(stats[:, 1, :], axis=0)                   # [C_pad]
    mean = sums / m_raw                                       # biased batch stats
    var = jnp.maximum(sumsq / m_raw - mean * mean, 0.0)
    inv_std = jax.lax.rsqrt(var + BN_EPS)
    gamma_p = jnp.pad(bn_gamma.astype(jnp.float32), (0, c_pad - cout))
    beta_p = jnp.pad(bn_beta.astype(jnp.float32), (0, c_pad - cout))
    scale = (gamma_p * inv_std).reshape(1, c_pad)
    shift = (beta_p - mean * gamma_p * inv_std).reshape(1, c_pad)

    # ---------------- Phase 2: normalize + LeakyReLU (pure streaming) ----------------
    # Independent, larger M tile for the elementwise sweep.
    per_row_bytes = c_pad * (2 * conv_isz + 2 * out_isz)
    d_best = 1
    for d in range(1, num_m + 1):
        if (num_m % d == 0 and tm * d <= 4096
                and tm * d * per_row_bytes + (2 << 20) <= budget):
            d_best = d
    tm2 = tm * d_best
    num_m2 = m_pad // tm2
    io_aliases = {0: 0} if x.dtype == conv_dtype else {}

    out_flat = pl.pallas_call(
        _bn_lrelu_kernel,
        out_shape=jax.ShapeDtypeStruct((m_pad, c_pad), out_dtype),
        grid=(num_m2,),
        in_specs=[
            pl.BlockSpec((tm2, c_pad), lambda i: (i, 0)),
            pl.BlockSpec((1, c_pad), lambda i: (0, 0)),
            pl.BlockSpec((1, c_pad), lambda i: (0, 0)),
        ],
        out_specs=pl.BlockSpec((tm2, c_pad), lambda i: (i, 0)),
        input_output_aliases=io_aliases,
        compiler_params=pltpu.CompilerParams(
            dimension_semantics=("parallel",),
            vmem_limit_bytes=budget,
        ),
    )(conv, scale, shift)

    # Strip padding, [M, Cout] -> [N, OH, OW, Cout]; NCHW only if requested (default,
    # to match PyTorch).  Keeping NHWC end-to-end avoids an extra relayout pass.
    out = out_flat[:m_raw, :cout].reshape(n, oh, ow, cout)
    if channels_last:
        return out
    return jnp.transpose(out, (0, 3, 1, 2))


if __name__ == "__main__":
    key = jax.random.PRNGKey(0)
    k_x, k_w = jax.random.split(key)

    N, Cin, H, W = 2, 4, 16, 16
    Cout = 8

    x = jax.random.normal(k_x, (N, Cin, H, W), dtype=jnp.float32)
    # Deterministic synthetic init (shape matches nn.Conv2d(in,out,4,2,1,bias=False)).
    fan_in = Cin * KH * KW
    conv_weight = (
        jax.random.uniform(k_w, (Cout, Cin, KH, KW), dtype=jnp.float32,
                           minval=-1.0, maxval=1.0) / jnp.sqrt(fan_in)
    )
    bn_gamma = jnp.ones((Cout,), dtype=jnp.float32)   # BatchNorm2d default weight
    bn_beta = jnp.zeros((Cout,), dtype=jnp.float32)   # BatchNorm2d default bias

    unet_down_jit = jax.jit(unet_down)
    out = unet_down_jit(x, conv_weight, bn_gamma, bn_beta)
    jax.block_until_ready(out)
    assert out.shape == (N, Cout, H // 2, W // 2), out.shape

    # Pure-JAX reference (f32) for a sanity check; bf16 matmul tolerance.
    ref_conv = jax.lax.conv_general_dilated(
        x, conv_weight, window_strides=(STRIDE, STRIDE),
        padding=((PAD, PAD), (PAD, PAD)),
        dimension_numbers=("NCHW", "OIHW", "NCHW"))
    r_mean = ref_conv.mean(axis=(0, 2, 3), keepdims=True)
    r_var = ref_conv.var(axis=(0, 2, 3), keepdims=True)
    ref = ((ref_conv - r_mean) * jax.lax.rsqrt(r_var + BN_EPS)
           * bn_gamma.reshape(1, -1, 1, 1) + bn_beta.reshape(1, -1, 1, 1))
    ref = jnp.where(ref >= 0, ref, LEAKY_SLOPE * ref)
    max_err = float(jnp.max(jnp.abs(out - ref)))
    assert max_err < 5e-2, f"max abs err {max_err}"

    print("KERNEL_OK")
</pallas_src>

<mosaic_0001>
module attributes {stable_mosaic.version = 11 : i64} {
  func.func @_bn_lrelu_kernel(%arg0: i32, %arg1: memref<128x128xbf16, #tpu.memory_space<vmem>>, %arg2: memref<1x128xf32, #tpu.memory_space<vmem>>, %arg3: memref<1x128xf32, #tpu.memory_space<vmem>>, %arg4: memref<128x128xf32, #tpu.memory_space<vmem>>) attributes {dimension_semantics = [#tpu.dimension_semantics<parallel>], iteration_bounds = array<i64: 1>, scalar_prefetch = 0 : i64, scratch_operands = 0 : i64, tpu.core_type = #tpu.core_type<tc>, window_params = [{transform_indices = @transform_0, window_bounds = array<i64: 128, 128>}, {pipeline_mode = #tpu.pipeline_mode<synchronous>, transform_indices = @transform_1, window_bounds = array<i64: 1, 128>}, {pipeline_mode = #tpu.pipeline_mode<synchronous>, transform_indices = @transform_2, window_bounds = array<i64: 1, 128>}, {transform_indices = @transform_3, window_bounds = array<i64: 128, 128>}]} {
    %c0 = arith.constant 0 : index
    %c0_0 = arith.constant 0 : index
    %0 = vector.load %arg1[%c0, %c0_0] : memref<128x128xbf16, #tpu.memory_space<vmem>>, vector<128x128xbf16>
    %1 = arith.extf %0 : vector<128x128xbf16> to vector<128x128xf32>
    %c0_1 = arith.constant 0 : index
    %c0_2 = arith.constant 0 : index
    %2 = vector.load %arg2[%c0_1, %c0_2] : memref<1x128xf32, #tpu.memory_space<vmem>>, vector<1x128xf32>
    %3 = vector.broadcast %2 : vector<1x128xf32> to vector<128x128xf32>
    %4 = arith.mulf %1, %3 : vector<128x128xf32>
    %c0_3 = arith.constant 0 : index
    %c0_4 = arith.constant 0 : index
    %5 = vector.load %arg3[%c0_3, %c0_4] : memref<1x128xf32, #tpu.memory_space<vmem>>, vector<1x128xf32>
    %6 = vector.broadcast %5 : vector<1x128xf32> to vector<128x128xf32>
    %7 = arith.addf %4, %6 : vector<128x128xf32>
    %cst = arith.constant 0.000000e+00 : f32
    %8 = vector.broadcast %cst : f32 to vector<128x128xf32>
    %9 = arith.cmpf oge, %7, %8 : vector<128x128xf32>
    %cst_5 = arith.constant 2.000000e-01 : f32
    %10 = vector.broadcast %cst_5 : f32 to vector<128x128xf32>
    %11 = arith.mulf %10, %7 : vector<128x128xf32>
    %12 = arith.select %9, %7, %11 : vector<128x128xi1>, vector<128x128xf32>
    %c0_6 = arith.constant 0 : index
    %c0_7 = arith.constant 0 : index
    %13 = vector.load %arg4[%c0_6, %c0_7] : memref<128x128xf32, #tpu.memory_space<vmem>>, vector<128x128xf32>
    tpu.vector_store %arg4[%c0_6, %c0_7], %12 {strides = array<i32>} : memref<128x128xf32, #tpu.memory_space<vmem>>, vector<128x128xf32>,
    return
  }
  func.func @transform_0(%arg0: i32) -> (i32, i32) {
    %c0_i32 = arith.constant 0 : i32
    %c0_i32_0 = arith.constant 0 : i32
    return %arg0, %c0_i32 : i32, i32
  }
  func.func @transform_1(%arg0: i32) -> (i32, i32) {
    %c0_i32 = arith.constant 0 : i32
    %c0_i32_0 = arith.constant 0 : i32
    %c0_i32_1 = arith.constant 0 : i32
    return %c0_i32, %c0_i32_0 : i32, i32
  }
  func.func @transform_2(%arg0: i32) -> (i32, i32) {
    %c0_i32 = arith.constant 0 : i32
    %c0_i32_0 = arith.constant 0 : i32
    %c0_i32_1 = arith.constant 0 : i32
    return %c0_i32, %c0_i32_0 : i32, i32
  }
  func.func @transform_3(%arg0: i32) -> (i32, i32) {
    %c0_i32 = arith.constant 0 : i32
    %c0_i32_0 = arith.constant 0 : i32
    return %arg0, %c0_i32 : i32, i32
  }
}

module attributes {stable_mosaic.version = 11 : i64} {
  func.func @_conv_stats_kernel(%arg0: i32, %arg1: i32, %arg2: memref<64x128xbf16, #tpu.memory_space<vmem>>, %arg3: memref<128x128xbf16, #tpu.memory_space<vmem>>, %arg4: memref<64x128xbf16, #tpu.memory_space<vmem>>, %arg5: memref<1x2x128xf32, #tpu.memory_space<vmem>>, %arg6: memref<64x128xf32, #tpu.memory_space<vmem>>) attributes {dimension_semantics = [#tpu.dimension_semantics<parallel>, #tpu.dimension_semantics<arbitrary>], iteration_bounds = array<i64: 2, 1>, scalar_prefetch = 0 : i64, scratch_operands = 1 : i64, tpu.core_type = #tpu.core_type<tc>, window_params = [{transform_indices = @transform_0, window_bounds = array<i64: 64, 128>}, {transform_indices = @transform_1, window_bounds = array<i64: 128, 128>}, {transform_indices = @transform_2, window_bounds = array<i64: 64, 128>}, {transform_indices = @transform_3, window_bounds = array<i64: 1, 2, 128>}]} {
    %c0 = arith.constant 0 : index
    %c0_0 = arith.constant 0 : index
    %0 = vector.load %arg2[%c0, %c0_0] : memref<64x128xbf16, #tpu.memory_space<vmem>>, vector<64x128xbf16>
    %c0_1 = arith.constant 0 : index
    %c0_2 = arith.constant 0 : index
    %1 = vector.load %arg3[%c0_1, %c0_2] : memref<128x128xbf16, #tpu.memory_space<vmem>>, vector<128x128xbf16>
    %cst = arith.constant dense<0.000000e+00> : vector<64x128xf32>
    %2 = tpu.matmul %0, %1, %cst {dimension_numbers = #tpu.dot_dimension_numbers<[1], [0], [0], [1], [0, 0, 1, 1], [], []>} : vector<64x128xbf16>, vector<128x128xbf16>, vector<64x128xf32> -> vector<64x128xf32>
    %c0_i32 = arith.constant 0 : i32
    %3 = arith.cmpi eq, %arg1, %c0_i32 : i32
    %4 = arith.extui %3 : i1 to i32
    %c0_i32_3 = arith.constant 0 : i32
    %5 = arith.cmpi ne, %4, %c0_i32_3 : i32
    scf.if %5 {
      %c0_8 = arith.constant 0 : index
      %c0_9 = arith.constant 0 : index
      %12 = vector.load %arg6[%c0_8, %c0_9] : memref<64x128xf32, #tpu.memory_space<vmem>>, vector<64x128xf32>
      tpu.vector_store %arg6[%c0_8, %c0_9], %2 {strides = array<i32>} : memref<64x128xf32, #tpu.memory_space<vmem>>, vector<64x128xf32>,
    } else {
    }
    %c0_i32_4 = arith.constant 0 : i32
    %6 = arith.cmpi sgt, %arg1, %c0_i32_4 : i32
    %7 = arith.extui %6 : i1 to i32
    %c0_i32_5 = arith.constant 0 : i32
    %8 = arith.cmpi ne, %7, %c0_i32_5 : i32
    scf.if %8 {
      %c0_8 = arith.constant 0 : index
      %c0_9 = arith.constant 0 : index
      %12 = vector.load %arg6[%c0_8, %c0_9] : memref<64x128xf32, #tpu.memory_space<vmem>>, vector<64x128xf32>
      %13 = arith.addf %12, %2 : vector<64x128xf32>
      %c0_10 = arith.constant 0 : index
      %c0_11 = arith.constant 0 : index
      %14 = vector.load %arg6[%c0_10, %c0_11] : memref<64x128xf32, #tpu.memory_space<vmem>>, vector<64x128xf32>
      tpu.vector_store %arg6[%c0_10, %c0_11], %13 {strides = array<i32>} : memref<64x128xf32, #tpu.memory_space<vmem>>, vector<64x128xf32>,
    } else {
    }
    %c0_i32_6 = arith.constant 0 : i32
    %9 = arith.cmpi eq, %arg1, %c0_i32_6 : i32
    %10 = arith.extui %9 : i1 to i32
    %c0_i32_7 = arith.constant 0 : i32
    %11 = arith.cmpi ne, %10, %c0_i32_7 : i32
    scf.if %11 {
      %c0_8 = arith.constant 0 : index
      %c0_9 = arith.constant 0 : index
      %12 = vector.load %arg6[%c0_8, %c0_9] : memref<64x128xf32, #tpu.memory_space<vmem>>, vector<64x128xf32>
      %13 = arith.truncf %12 : vector<64x128xf32> to vector<64x128xbf16>
      %c0_10 = arith.constant 0 : index
      %c0_11 = arith.constant 0 : index
      %14 = vector.load %arg4[%c0_10, %c0_11] : memref<64x128xbf16, #tpu.memory_space<vmem>>, vector<64x128xbf16>
      tpu.vector_store %arg4[%c0_10, %c0_11], %13 {strides = array<i32>} : memref<64x128xbf16, #tpu.memory_space<vmem>>, vector<64x128xbf16>,
      %cst_12 = arith.constant dense<0.000000e+00> : vector<128xf32>
      %15 = vector.multi_reduction <add>, %12, %cst_12 [0] : vector<64x128xf32> to vector<128xf32>
      %16 = vector.shape_cast %15 : vector<128xf32> to vector<1x128xf32>
      %17 = arith.mulf %12, %12 : vector<64x128xf32>
      %cst_13 = arith.constant dense<0.000000e+00> : vector<128xf32>
      %18 = vector.multi_reduction <add>, %17, %cst_13 [0] : vector<64x128xf32> to vector<128xf32>
      %19 = vector.shape_cast %18 : vector<128xf32> to vector<1x128xf32>
      %20 = tpu.concatenate %16, %19 in 0 : vector<1x128xf32>, vector<1x128xf32> -> vector<2x128xf32>
      %21 = vector.shape_cast %20 : vector<2x128xf32> to vector<1x2x128xf32>
      %c0_14 = arith.constant 0 : index
      %c0_15 = arith.constant 0 : index
      %c0_16 = arith.constant 0 : index
      %22 = vector.load %arg5[%c0_14, %c0_15, %c0_16] : memref<1x2x128xf32, #tpu.memory_space<vmem>>, vector<1x2x128xf32>
      tpu.vector_store %arg5[%c0_14, %c0_15, %c0_16], %21 {strides = array<i32>} : memref<1x2x128xf32, #tpu.memory_space<vmem>>, vector<1x2x128xf32>,
    } else {
    }
    return
  }
  func.func @transform_0(%arg0: i32, %arg1: i32) -> (i32, i32) {
    %c0_i32 = arith.constant 0 : i32
    return %arg0, %arg1 : i32, i32
  }
  func.func @transform_1(%arg0: i32, %arg1: i32) -> (i32, i32) {
    %c0_i32 = arith.constant 0 : i32
    %c0_i32_0 = arith.constant 0 : i32
    return %arg1, %c0_i32 : i32, i32
  }
  func.func @transform_2(%arg0: i32, %arg1: i32) -> (i32, i32) {
    %c0_i32 = arith.constant 0 : i32
    %c0_i32_0 = arith.constant 0 : i32
    return %arg0, %c0_i32 : i32, i32
  }
  func.func @transform_3(%arg0: i32, %arg1: i32) -> (i32, i32, i32) {
    %c0_i32 = arith.constant 0 : i32
    %c0_i32_0 = arith.constant 0 : i32
    %c0_i32_1 = arith.constant 0 : i32
    return %arg0, %c0_i32, %c0_i32_0 : i32, i32, i32
  }
}

</mosaic_0001>

<bundles_post_ra>
// kernel: unet_down.2
= control target key start
LH: loop header
LB: loop body
LE: loop exit
PB: predicated region body
PF: predicated region fallthrough
CT: control target
= control target key end

     0   :  { %s830_s12 = smov 0   ;;  %s832_s13 = smov 0   ;;  %s908_s0 = inlined_call_operand.vmem [shape: bf16[128,128], index: 0, kind: input, shape index: {}]   ;;  %s909_s1 = inlined_call_operand.vmem [shape: bf16[128,128], index: 1, kind: input, shape index: {}]   ;;  %s910_s2 = inlined_call_operand.vmem [shape: bf16[128,128], index: 2, kind: output, shape index: {0}]   ;;  %s911_s3 = inlined_call_operand.vmem [shape: f32[2,2,128], index: 3, kind: output, shape index: {1}]  }
   0x1   :  { %s834_s14 = smov 0  }
   0x2 LB: > { %s26_s15 = sadd.s32 1, %s804_s13  ;;  %p639_p0 = scmp.ge.s32.totalorder %s808_s14, 1  ;;  %s808_s14 = sphi %s834_s14, %s14_s14   ;;  %s804_s13 = sphi %s832_s13, %s913_s13   ;;  %s800_s12 = sphi %s830_s12, %s912_s12  }
   0x3   : > { %p28_p1 = scmp.ge.s32.totalorder %s26_s15, 2  ;;  %p169_p2 = scmp.lt.s32.totalorder %s808_s14, 3 }
   0x5   : > { %s915_s15 = smov (%p28_p1, %s26_s15), 0  ;;  %p170_p3 = pnand %p639_p0, %p169_p2 }
   0x6   : > { %v774_v0 = vld [vmem:[%s909_s1] sm:$0xff] (!%p170_p3)   ;;  %s640_s18 = sshll.u32 (!%p170_p3), %s800_s12, 3  ;;  %v775_v1 = vld [vmem:[%s909_s1 + $0x8] sm:$0xff] (!%p170_p3)   ;;  %v776_v2 = vld [vmem:[%s909_s1 + $0x10] sm:$0xff] (!%p170_p3)   ;;  %p226_p5 = scmp.lt.s32.totalorder (!%p170_p3), %s800_s12, 1  ;;  %vm517_vm0 = vcmask (!%p170_p3), 1040384  }
   0x7   : > { %173 = sbr.rel (%p170_p3) target bundleno = 284 (0x11c), region = 28  ;;  %p206_p4 = scmp.lt.s32.totalorder (!%p170_p3), %s640_s18, 15  ;;  %710 = vmatprep.subr.bf16.mxu0 (!%p170_p3), %v774_v0  ;;  %734 = vmatprep.subr.bf16.mxu1 (!%p170_p3), %v774_v0  ;;  %v777_v3 = vld [vmem:[%s909_s1 + $0x18] sm:$0xff] (!%p170_p3)   ;;  %v778_v6 = vld [vmem:[%s909_s1 + $0x20] sm:$0xff] (!%p170_p3)   ;;  %v779_v7 = vld [vmem:[%s909_s1 + $0x28] sm:$0xff] (!%p170_p3)  }
   0x8   : > { %711 = vmatpush3.bf16.msra.mxu0 (!%p170_p3), %v774_v0  ;;  %742 = vmatpush3.bf16.msra.mxu1 (!%p170_p3), %v774_v0  ;;  %v780_v8 = vld [vmem:[%s909_s1 + $0x30] sm:$0xff] (!%p170_p3)   ;;  %v781_v9 = vld [vmem:[%s909_s1 + $0x38] sm:$0xff] (!%p170_p3)  }
   0x9   : > { %712 = vmatprep.subr.bf16.mxu0 (!%p170_p3), %v775_v1  ;;  %735 = vmatprep.subr.bf16.mxu1 (!%p170_p3), %v775_v1 }
   0xc   : > { %713 = vmatpush3.bf16.msra.mxu0 (!%p170_p3), %v775_v1  ;;  %743 = vmatpush3.bf16.msra.mxu1 (!%p170_p3), %v775_v1 }
   0xd   : > { %714 = vmatprep.subr.bf16.mxu0 (!%p170_p3), %v776_v2  ;;  %736 = vmatprep.subr.bf16.mxu1 (!%p170_p3), %v776_v2 }
   0xe   : > { %s917_s18 = smov (!%p206_p4, %s640_s18), 15  ;;  %s919_s12 = smov (!%p226_p5, %s800_s12), 1 }
   0xf   : > { %s641_s23 = sshll.u32 %s917_s18, 2  ;;  %s644_s17 = sshll.u32 %s919_s12, 1 }
  0x10   : > { %s868_s26 = scalar_lea.vmem %s908_s0, %s641_s23  ;;  %715 = vmatpush3.bf16.msra.mxu0 %v776_v2  ;;  %744 = vmatpush3.bf16.msra.mxu1 %v776_v2  ;;  %s224_s16 = scalar_lea.vmem %s910_s2, %s641_s23 }
  0x11   : > { %v782_v4 = vld [vmem:[%s868_s26] sm:$0xff]   ;;  %v784_v5 = vld [vmem:[%s868_s26 + $0x10] sm:$0xff]   ;;  %716 = vmatprep.subr.bf16.mxu0 %v777_v3  ;;  %737 = vmatprep.subr.bf16.mxu1 %v777_v3  ;;  %v783_v10 = vld [vmem:[%s868_s26 + $0x8] sm:$0xff]   ;;  %s229_s20 = scalar_lea.vmem %s911_s3, %s644_s17 }
  0x12   : > { %726 = vmatprep.mubr.bf16.mxu0 %v782_v4  ;;  %730 = vmatprep.mubr.bf16.mxu1 %v784_v5  ;;  %v785_v11 = vld [vmem:[%s868_s26 + $0x18] sm:$0xff]  }
  0x14   : > { %717 = vmatpush3.bf16.msra.mxu0 %v777_v3  ;;  %745 = vmatpush3.bf16.msra.mxu1 %v777_v3 }
  0x15   : > { %718 = vmatprep.subr.bf16.mxu0 %v778_v6  ;;  %738 = vmatprep.subr.bf16.mxu1 %v778_v6 }
  0x18   : > { %719 = vmatpush3.bf16.msra.mxu0 %v778_v6  ;;  %746 = vmatpush3.bf16.msra.mxu1 %v778_v6 }
  0x19   : > { %720 = vmatprep.subr.bf16.mxu0 %v779_v7  ;;  %739 = vmatprep.subr.bf16.mxu1 %v779_v7 }
  0x1c   : > { %721 = vmatpush3.bf16.msra.mxu0 %v779_v7  ;;  %747 = vmatpush3.bf16.msra.mxu1 %v779_v7 }
  0x1d   : > { %722 = vmatprep.subr.bf16.mxu0 %v780_v8  ;;  %740 = vmatprep.subr.bf16.mxu1 %v780_v8 }
  0x20   : > { %723 = vmatpush3.bf16.msra.mxu0 %v780_v8  ;;  %748 = vmatpush3.bf16.msra.mxu1 %v780_v8 }
  0x21   : > { %724 = vmatprep.subr.bf16.mxu0 %v781_v9  ;;  %741 = vmatprep.subr.bf16.mxu1 %v781_v9 }
  0x24   : > { %725 = vmatpush3.bf16.msra.mxu0 %v781_v9  ;;  %749 = vmatpush3.bf16.msra.mxu1 %v781_v9 }
  0x27   : > { %727 = vmatmul.mubr.bf16.vlgmr.msra.gmra.mrb[0].mxu0 %v783_v10  ;;  %731 = vmatmul.mubr.bf16.vlgmr.msra.gmra.mrb[0].mxu1 %v785_v11 }
  0xfa   : > { %v728_v12 = vpop.f32.mrb[0].mxu0  ;;  %v732_v13 = vpop.f32.mrb[0].mxu1 }
  0xfb   : > { %v361_v14 = vpop.f32.mrb[1].mxu0  ;;  %v377_v15 = vpop.f32.mrb[1].mxu1  ;;  %v498_v27 = vmul.f32 %v728_v12, %v728_v12  ;;  %v502_v39 = vmul.f32 %v732_v13, %v732_v13 }
  0xfc   : > { %v729_v16 = vpop.f32.mrb[2].mxu0  ;;  %v733_v17 = vpop.f32.mrb[2].mxu1  ;;  %v496_v18 = vmul.f32 %v361_v14, %v361_v14  ;;  %v500_v33 = vmul.f32 %v377_v15, %v377_v15 }
  0xfd   : > { %v683_v19 = vpack.c.bf16 %v729_v16, %v728_v12  ;;  %v364_v20 = vpop.f32.mrb[3].mxu0  ;;  %v693_v21 = vpack.c.bf16 %v733_v17, %v732_v13  ;;  %v380_v22 = vpop.f32.mrb[3].mxu1  ;;  %v499_v30 = vmul.f32 %v729_v16, %v729_v16  ;;  %v503_v42 = vmul.f32 %v733_v17, %v733_v17 }
  0xfe   : > { %v678_v23 = vpack.c.bf16 %v364_v20, %v361_v14  ;;  %v483_v24 = vadd.f32 %v364_v20, %v361_v14  ;;  %v497_v25 = vmul.f32 %v364_v20, %v364_v20  ;;  %v688_v26 = vpack.c.bf16 %v380_v22, %v377_v15 }
  0xff   : > { %695 = vst [vmem:[%s224_s16 + $0x8] sm:$0xff] %v683_v19   ;;  %697 = vst [vmem:[%s224_s16 + $0x18] sm:$0xff] %v693_v21   ;;  %v501_v38 = vmul.f32 %v380_v22, %v380_v22 }
 0x100   : > { %679 = vst [vmem:[%s224_s16] sm:$0xff] %v678_v23   ;;  %v484_v28 = vadd.f32 %v728_v12, %v483_v24  ;;  %v504_v29 = vadd.f32 %v497_v25, %v496_v18  ;;  %696 = vst [vmem:[%s224_s16 + $0x10] sm:$0xff] %v688_v26  }
 0x102   : > { %v505_v31 = vadd.f32 %v504_v29, %v498_v27  ;;  %v485_v32 = vadd.f32 %v729_v16, %v484_v28 }
 0x104   : > { %v486_v34 = vadd.f32 %v485_v32, %v377_v15  ;;  %v506_v35 = vadd.f32 %v505_v31, %v499_v30 }
 0x106   : > { %v507_v36 = vadd.f32 %v506_v35, %v500_v33  ;;  %v487_v37 = vadd.f32 %v486_v34, %v380_v22 }
 0x108   : > { %v488_v40 = vadd.f32 %v732_v13, %v487_v37  ;;  %v508_v41 = vadd.f32 %v507_v36, %v501_v38 }
 0x10a   : > { %v489_v43 = vadd.f32 %v733_v17, %v488_v40  ;;  %v509_v44 = vadd.f32 %v508_v41, %v502_v39 }
 0x10c   : > { %v490_v45 = vrot.slane %v489_v43, 4  ;;  %v510_v46 = vadd.f32 %v509_v44, %v503_v42 }
 0x10e   : > { %v491_v47 = vadd.f32 %v490_v45, %v489_v43  ;;  %v511_v48 = vrot.slane %v510_v46, 4 }
 0x110   : > { %v492_v49 = vrot.slane %v491_v47, 2  ;;  %v512_v50 = vadd.f32 %v511_v48, %v510_v46 }
 0x112   : > { %v493_v51 = vadd.f32 %v492_v49, %v491_v47  ;;  %v513_v52 = vrot.slane %v512_v50, 2 }
 0x114   : > { %v494_v53 = vrot.slane %v493_v51, 1  ;;  %v514_v54 = vadd.f32 %v513_v52, %v512_v50 }
 0x116   : > { %v515_v55 = vrot.slane %v514_v54, 1  ;;  %v495_v56 = vadd.f32 %v494_v53, %v493_v51 }
 0x118   : > { %v516_v57 = vadd.f32 %v515_v55, %v514_v54 }
 0x11a   : > { %v518_v58 = vsel %vm517_vm0, %v495_v56, %v516_v57 }
 0x11b   : > { %519 = vst [vmem:[%s229_s20] sm:$0x3] %v518_v58 }
 0x11c PF: > { %s14_s14 = sadd.s32 1, %s808_s14   ;;  %s912_s12 = smov %s804_s13 }
 0x11d   : > { %p11_p6 = scmp.ge.s32.totalorder %s14_s14, 4   ;;  %s913_s13 = smov %s915_s15 }
 0x11f   :  { %13 = sbr.rel (!%p11_p6) target bundleno = 2 (0x2), region = 85 }

// kernel: unet_down.3
= control target key start
LH: loop header
LB: loop body
LE: loop exit
PB: predicated region body
PF: predicated region fallthrough
CT: control target
= control target key end

     0   :  { %s335_s0 = inlined_call_operand.vmem [shape: bf16[128,128], index: 0, kind: input, shape index: {}]   ;;  %s336_s1 = inlined_call_operand.vmem [shape: f32[1,128], index: 1, kind: input, shape index: {}]   ;;  %s337_s2 = inlined_call_operand.vmem [shape: f32[1,128], index: 2, kind: input, shape index: {}]   ;;  %s338_s3 = inlined_call_operand.vmem [shape: f32[128,128], index: 3, kind: output, shape index: {}]  }
   0x1   :  { %v163_v0 = vld [vmem:[%s335_s0] sm:$0xff]   ;;  %v194_v4 = vld [vmem:[%s335_s0 + $0x8] sm:$0xff]   ;;  %v195_v5 = vld [vmem:[%s335_s0 + $0x10] sm:$0xff]  }
   0x2   :  { %v227_v1 = vld [vmem:[%s336_s1] ss:$0 sm:$0xff]  ;;  %v164_v2 = vunpack.c.l.bf16 %v163_v0  ;;  %v165_v3 = vunpack.c.h.bf16 %v163_v0  ;;  %v196_v6 = vld [vmem:[%s335_s0 + $0x18] sm:$0xff]   ;;  %v168_v8 = vunpack.c.l.bf16 %v194_v4  ;;  %v169_v9 = vunpack.c.h.bf16 %v194_v4  ;;  %v198_v36 = vld [vmem:[%s335_s0 + $0x28] sm:$0xff]  }
   0x3   :  { %v241_v7 = vld [vmem:[%s337_s2] ss:$0 sm:$0xff]  ;;  %v172_v10 = vunpack.c.l.bf16 %v195_v5  ;;  %v173_v11 = vunpack.c.h.bf16 %v195_v5  ;;  %v176_v14 = vunpack.c.l.bf16 %v196_v6  ;;  %v177_v15 = vunpack.c.h.bf16 %v196_v6  ;;  %v199_v48 = vld [vmem:[%s335_s0 + $0x30] sm:$0xff]   ;;  %v200_v55 = vld [vmem:[%s335_s0 + $0x38] sm:$0xff]  }
   0x4   :  { %v53_v12 = vmul.f32 %v164_v2, %v227_v1  ;;  %v54_v13 = vmul.f32 %v165_v3, %v227_v1  ;;  %v55_v16 = vmul.f32 %v168_v8, %v227_v1  ;;  %v56_v17 = vmul.f32 %v169_v9, %v227_v1  ;;  %v197_v28 = vld [vmem:[%s335_s0 + $0x20] sm:$0xff]  }
   0x5   :  { %v57_v18 = vmul.f32 %v172_v10, %v227_v1  ;;  %v58_v19 = vmul.f32 %v173_v11, %v227_v1  ;;  %v59_v22 = vmul.f32 %v176_v14, %v227_v1  ;;  %v60_v23 = vmul.f32 %v177_v15, %v227_v1 }
   0x6   :  { %v76_v20 = vadd.f32 %v241_v7, %v53_v12  ;;  %v77_v21 = vadd.f32 %v241_v7, %v54_v13  ;;  %v78_v24 = vadd.f32 %v241_v7, %v55_v16  ;;  %v79_v25 = vadd.f32 %v241_v7, %v56_v17 }
   0x7   :  { %v80_v26 = vadd.f32 %v241_v7, %v57_v18  ;;  %v81_v27 = vadd.f32 %v241_v7, %v58_v19  ;;  %v82_v41 = vadd.f32 %v241_v7, %v59_v22  ;;  %v83_v42 = vadd.f32 %v241_v7, %v60_v23 }
   0x8   :  { %vm92_vm0 = vcmp.ge.f32.partialorder %v76_v20, 0.0  ;;  %v108_v29 = vmul.f32 0.2, %v76_v20  ;;  %vm93_vm1 = vcmp.ge.f32.partialorder %v77_v21, 0.0  ;;  %v109_v30 = vmul.f32 0.2, %v77_v21 }
   0x9   :  { %vm94_vm2 = vcmp.ge.f32.partialorder %v78_v24, 0.0  ;;  %v110_v31 = vmul.f32 0.2, %v78_v24  ;;  %vm95_vm3 = vcmp.ge.f32.partialorder %v79_v25, 0.0  ;;  %v111_v32 = vmul.f32 0.2, %v79_v25 }
   0xa   :  { %v124_v33 = vsel %vm92_vm0, %v76_v20, %v108_v29  ;;  %v125_v34 = vsel %vm93_vm1, %v77_v21, %v109_v30  ;;  %vm96_vm4 = vcmp.ge.f32.partialorder %v80_v26, 0.0  ;;  %v112_v35 = vmul.f32 0.2, %v80_v26 }
   0xb   :  { %140 = vst [vmem:[%s338_s3] sm:$0xff] %v124_v33  ;;  %141 = vst [vmem:[%s338_s3 + $0x8] sm:$0xff] %v125_v34  ;;  %v126_v37 = vsel %vm94_vm2, %v78_v24, %v110_v31  ;;  %v127_v38 = vsel %vm95_vm3, %v79_v25, %v111_v32  ;;  %vm97_vm5 = vcmp.ge.f32.partialorder %v81_v27, 0.0  ;;  %v113_v39 = vmul.f32 0.2, %v81_v27 }
   0xc   :  { %142 = vst [vmem:[%s338_s3 + $0x10] sm:$0xff] %v126_v37  ;;  %143 = vst [vmem:[%s338_s3 + $0x18] sm:$0xff] %v127_v38  ;;  %v128_v40 = vsel %vm96_vm4, %v80_v26, %v112_v35  ;;  %v180_v43 = vunpack.c.l.bf16 %v197_v28  ;;  %v181_v45 = vunpack.c.h.bf16 %v197_v28  ;;  %v184_v46 = vunpack.c.l.bf16 %v198_v36 }
   0xd   :  { %144 = vst [vmem:[%s338_s3 + $0x20] sm:$0xff] %v128_v40  ;;  %v129_v44 = vsel %vm97_vm5, %v81_v27, %v113_v39  ;;  %v185_v47 = vunpack.c.h.bf16 %v198_v36  ;;  %vm98_vm6 = vcmp.ge.f32.partialorder %v82_v41, 0.0  ;;  %v114_v49 = vmul.f32 0.2, %v82_v41 }
   0xe   :  { %145 = vst [vmem:[%s338_s3 + $0x28] sm:$0xff] %v129_v44  ;;  %vm99_vm7 = vcmp.ge.f32.partialorder %v83_v42, 0.0  ;;  %v115_v50 = vmul.f32 0.2, %v83_v42  ;;  %v61_v51 = vmul.f32 %v180_v43, %v227_v1  ;;  %v62_v52 = vmul.f32 %v181_v45, %v227_v1 }
   0xf   :  { %v63_v53 = vmul.f32 %v184_v46, %v227_v1  ;;  %v64_v54 = vmul.f32 %v185_v47, %v227_v1  ;;  %v130_v56 = vsel %vm98_vm6, %v82_v41, %v114_v49  ;;  %v188_v58 = vunpack.c.l.bf16 %v199_v48 }
  0x10   :  { %v131_v57 = vsel %vm99_vm7, %v83_v42, %v115_v50  ;;  %v189_v59 = vunpack.c.h.bf16 %v199_v48  ;;  %146 = vst [vmem:[%s338_s3 + $0x30] sm:$0xff] %v130_v56  ;;  %v84_v60 = vadd.f32 %v241_v7, %v61_v51  ;;  %v85_v61 = vadd.f32 %v241_v7, %v62_v52 }
  0x11   :  { %147 = vst [vmem:[%s338_s3 + $0x38] sm:$0xff] %v131_v57  ;;  %v86_v62 = vadd.f32 %v241_v7, %v63_v53  ;;  %v87_v63 = vadd.f32 %v241_v7, %v64_v54  ;;  %v65_v0 = vmul.f32 %v188_v58, %v227_v1  ;;  %v192_v3 = vunpack.c.l.bf16 %v200_v55 }
  0x12   :  { %v66_v2 = vmul.f32 %v189_v59, %v227_v1  ;;  %v193_v4 = vunpack.c.h.bf16 %v200_v55  ;;  %vm100_vm8 = vcmp.ge.f32.partialorder %v84_v60, 0.0  ;;  %v116_v5 = vmul.f32 0.2, %v84_v60 }
  0x13   :  { %vm101_vm9 = vcmp.ge.f32.partialorder %v85_v61, 0.0  ;;  %v117_v6 = vmul.f32 0.2, %v85_v61  ;;  %vm102_vm10 = vcmp.ge.f32.partialorder %v86_v62, 0.0  ;;  %v118_v8 = vmul.f32 0.2, %v86_v62 }
  0x14   :  { %vm103_vm11 = vcmp.ge.f32.partialorder %v87_v63, 0.0  ;;  %v119_v9 = vmul.f32 0.2, %v87_v63  ;;  %v132_v10 = vsel %vm100_vm8, %v84_v60, %v116_v5  ;;  %v88_v12 = vadd.f32 %v241_v7, %v65_v0 }
  0x15   :  { %v133_v11 = vsel %vm101_vm9, %v85_v61, %v117_v6  ;;  %v89_v13 = vadd.f32 %v241_v7, %v66_v2  ;;  %148 = vst [vmem:[%s338_s3 + $0x40] sm:$0xff] %v132_v10  ;;  %v134_v14 = vsel %vm102_vm10, %v86_v62, %v118_v8  ;;  %v67_v16 = vmul.f32 %v192_v3, %v227_v1 }
  0x16   :  { %149 = vst [vmem:[%s338_s3 + $0x48] sm:$0xff] %v133_v11  ;;  %v135_v15 = vsel %vm103_vm11, %v87_v63, %v119_v9  ;;  %v68_v17 = vmul.f32 %v193_v4, %v227_v1  ;;  %150 = vst [vmem:[%s338_s3 + $0x50] sm:$0xff] %v134_v14  ;;  %vm104_vm12 = vcmp.ge.f32.partialorder %v88_v12, 0.0  ;;  %v120_v18 = vmul.f32 0.2, %v88_v12 }
  0x17   :  { %151 = vst [vmem:[%s338_s3 + $0x58] sm:$0xff] %v135_v15  ;;  %vm105_vm13 = vcmp.ge.f32.partialorder %v89_v13, 0.0  ;;  %v121_v19 = vmul.f32 0.2, %v89_v13  ;;  %v90_v20 = vadd.f32 %v241_v7, %v67_v16 }
  0x18   :  { %v91_v21 = vadd.f32 %v241_v7, %v68_v17  ;;  %v136_v22 = vsel %vm104_vm12, %v88_v12, %v120_v18 }
  0x19   :  { %v137_v23 = vsel %vm105_vm13, %v89_v13, %v121_v19  ;;  %152 = vst [vmem:[%s338_s3 + $0x60] sm:$0xff] %v136_v22  ;;  %vm106_vm14 = vcmp.ge.f32.partialorder %v90_v20, 0.0  ;;  %v122_v1 = vmul.f32 0.2, %v90_v20 }
  0x1a   :  { %153 = vst [vmem:[%s338_s3 + $0x68] sm:$0xff] %v137_v23  ;;  %vm107_vm15 = vcmp.ge.f32.partialorder %v91_v21, 0.0  ;;  %v123_v24 = vmul.f32 0.2, %v91_v21 }
  0x1b   :  { %v138_v25 = vsel %vm106_vm14, %v90_v20, %v122_v1 }
  0x1c   :  { %v139_v26 = vsel %vm107_vm15, %v91_v21, %v123_v24  ;;  %154 = vst [vmem:[%s338_s3 + $0x70] sm:$0xff] %v138_v25 }
  0x1d   :  { %155 = vst [vmem:[%s338_s3 + $0x78] sm:$0xff] %v139_v26 }

</bundles_post_ra>
